<compile_context>
chip_gen: v7x
topology: tpu7x:2x2x1
jax: 0.10.0
libtpu: 0.0.40
codegen_flags: <defaults>
</compile_context>

<pallas_src>
import numpy as np
import jax
import jax.numpy as jnp
from jax.experimental import pallas as pl
from jax.experimental.pallas import tpu as pltpu

# ----------------------- synthetic game constants ---------------------------
COLOR_COUNT = 4
CARD_VALUES_COUNT = 13
CARD_DIM = COLOR_COUNT + CARD_VALUES_COUNT          # 17 (card one-hot width)
ACTION_SPACE_SIZE = 41                              # BaseRLAgent.ACTION_SPACE_SIZE
CARD_EMBEDDING_SIZE = 3                             # _MyModel1.CARD_EMBEDDING_SIZE
INPUT_SIZE = 234                                    # _MyModel1.INPUT_SIZE
HIDDEN = 128
HIDDEN_LAYERS = (HIDDEN, HIDDEN)

N_HAND = 16       # cards in sorted_hand_ohe
N_PILE = 4        # top cards in own / opp / discard piles (each)
N_CARDS = N_HAND + 3 * N_PILE                       # 28

# per-feature widths of the flat model input; must sum to INPUT_SIZE == 234
FEAT = {
    "hand_emb": N_HAND * CARD_EMBEDDING_SIZE,                 # 48
    "norm_hand_val_diff_to_own_pile": 64,
    "can_opponent_play_my_card": 64,
    "own_pile_emb": N_PILE * CARD_EMBEDDING_SIZE,             # 12
    "norm_own_pile_scores": 4,
    "norm_total_own_score": 1,
    "opp_pile_emb": N_PILE * CARD_EMBEDDING_SIZE,             # 12
    "norm_opp_pile_scores": 4,
    "norm_total_opp_score": 1,
    "discard_pile_emb": N_PILE * CARD_EMBEDDING_SIZE,         # 12
    "norm_discard_pile_val_diff_to_own_pile": 11,
    "draw_deck_size": 1,
}
assert sum(FEAT.values()) == INPUT_SIZE

N_EMB = N_CARDS * CARD_EMBEDDING_SIZE               # 84 embedding positions
N_SCAL = INPUT_SIZE - N_EMB                         # 150 scalar-feature positions

# padded, lane/sublane-aligned kernel shapes
CARDS_K = N_CARDS * CARD_DIM                        # 476
CARDS_PAD_K = 512                                   # flattened one-hots, K-padded
EMB_PAD = 128                                       # padded embedding row width
SCAL_PAD_K = 256                                    # padded scalar-feature width
X1_K = EMB_PAD + SCAL_PAD_K                         # 384 (merged layer-1 K dim)
OUT_PAD = 128                                       # lane-dense output width

TM_MAX = 256                                        # max batch-block rows (VMEM safe on v7x)
TM_MIN = 16                                         # bf16-friendly sublane tile


# --------------------- input-layout position bookkeeping ---------------------
_LAYOUT = [
    ("emb", FEAT["hand_emb"]),
    ("scal", FEAT["norm_hand_val_diff_to_own_pile"]),
    ("scal", FEAT["can_opponent_play_my_card"]),
    ("emb", FEAT["own_pile_emb"]),
    ("scal", FEAT["norm_own_pile_scores"]),
    ("scal", FEAT["norm_total_own_score"]),
    ("emb", FEAT["opp_pile_emb"]),
    ("scal", FEAT["norm_opp_pile_scores"]),
    ("scal", FEAT["norm_total_opp_score"]),
    ("emb", FEAT["discard_pile_emb"]),
    ("scal", FEAT["norm_discard_pile_val_diff_to_own_pile"]),
    ("scal", FEAT["draw_deck_size"]),
]


def _positions():
    emb_idx, scal_idx = [], []
    pos = 0
    for kind, width in _LAYOUT:
        (emb_idx if kind == "emb" else scal_idx).extend(range(pos, pos + width))
        pos += width
    assert pos == INPUT_SIZE
    return np.asarray(emb_idx, np.int32), np.asarray(scal_idx, np.int32)


_EMB_IDX, _SCAL_IDX = _positions()
assert _EMB_IDX.shape[0] == N_EMB and _SCAL_IDX.shape[0] == N_SCAL


# ----------------------------- fused Pallas kernel ---------------------------
def _fused_kernel(cards_ref, scal_ref,
                  wbd_ref, bbd_ref,
                  w1_ref, b1_ref,
                  w2_ref, b2_ref,
                  w3_ref, b3_ref,
                  out_ref, x1_ref):
    # cards: (TM, 512) bf16 flattened/padded card encodings of all 28 cards.
    # scal : (TM, 256) bf16 packed/padded scalar features.
    # Card embedding for all 28 cards at once via the block-diagonal shared
    # embedding weight -> (TM, 128) f32 where cols [0,84) are the flat embs.
    e = jnp.dot(cards_ref[...], wbd_ref[...], preferred_element_type=jnp.float32)
    e = jnp.maximum(e + bbd_ref[...], 0.0)

    # Stage [relu'd embeddings | scalar features] as a single (TM, 384) bf16
    # operand so layer 1 is ONE MXU pass against the pre-concatenated W1.
    x1_ref[:, :EMB_PAD] = e.astype(jnp.bfloat16)
    x1_ref[:, EMB_PAD:] = scal_ref[...]

    h = jnp.dot(x1_ref[...], w1_ref[...], preferred_element_type=jnp.float32)
    h = jnp.maximum(h + b1_ref[...], 0.0)

    # Second hidden layer.
    h = jnp.dot(h.astype(jnp.bfloat16), w2_ref[...],
                preferred_element_type=jnp.float32)
    h = jnp.maximum(h + b2_ref[...], 0.0)

    # Output layer (lane-dense, zero-padded to 128; wrapper slices 41 logits).
    out_ref[...] = (
        jnp.dot(h.astype(jnp.bfloat16), w3_ref[...],
                preferred_element_type=jnp.float32) + b3_ref[...]
    )


def _choose_tm(m, tm_max):
    tm = TM_MIN
    while tm < tm_max and tm < m:
        tm *= 2
    return tm


def fused_forward(cards, scal, kp, *, tm_max=TM_MAX):
    """cards: (M, 512) bf16, scal: (M, 256) bf16 -> (M, 128) f32 padded logits."""
    m = cards.shape[0]
    tm = _choose_tm(m, tm_max)
    n_blocks = pl.cdiv(m, tm)
    m_pad = n_blocks * tm
    if m_pad != m:
        cards = jnp.pad(cards, ((0, m_pad - m), (0, 0)))
        scal = jnp.pad(scal, ((0, m_pad - m), (0, 0)))

    weight_elems = (CARDS_PAD_K * EMB_PAD + X1_K * HIDDEN
                    + HIDDEN * HIDDEN + HIDDEN * OUT_PAD)
    flops = 2 * m_pad * weight_elems
    bytes_accessed = (2 * weight_elems                              # bf16 weights
                      + 4 * (EMB_PAD + HIDDEN + HIDDEN + OUT_PAD)   # f32 biases
                      + 2 * m_pad * (CARDS_PAD_K + SCAL_PAD_K)      # bf16 acts in
                      + 4 * m_pad * OUT_PAD)                        # f32 logits out

    row_block = lambda i: (i, 0)      # activation blocks walk the batch axis
    resident = lambda i: (0, 0)       # weights stay VMEM-resident across steps

    grid_spec = pltpu.PrefetchScalarGridSpec(
        num_scalar_prefetch=0,
        grid=(n_blocks,),
        in_specs=[
            pl.BlockSpec((tm, CARDS_PAD_K), row_block),
            pl.BlockSpec((tm, SCAL_PAD_K), row_block),
            pl.BlockSpec((CARDS_PAD_K, EMB_PAD), resident),   # w_bd
            pl.BlockSpec((1, EMB_PAD), resident),             # b_bd
            pl.BlockSpec((X1_K, HIDDEN), resident),           # w1 (emb rows ++ scal rows)
            pl.BlockSpec((1, HIDDEN), resident),              # b1
            pl.BlockSpec((HIDDEN, HIDDEN), resident),         # w2
            pl.BlockSpec((1, HIDDEN), resident),              # b2
            pl.BlockSpec((HIDDEN, OUT_PAD), resident),        # w3
            pl.BlockSpec((1, OUT_PAD), resident),             # b3
        ],
        out_specs=pl.BlockSpec((tm, OUT_PAD), row_block),
        scratch_shapes=[pltpu.VMEM((tm, X1_K), jnp.bfloat16)],
    )

    out = pl.pallas_call(
        _fused_kernel,
        out_shape=jax.ShapeDtypeStruct((m_pad, OUT_PAD), jnp.float32),
        grid_spec=grid_spec,
        compiler_params=pltpu.CompilerParams(
            dimension_semantics=("parallel",)),
        cost_estimate=pl.CostEstimate(
            flops=flops, transcendentals=0, bytes_accessed=bytes_accessed),
    )(cards, scal,
      kp["w_bd"], kp["b_bd"],
      kp["w1"], kp["b1"],
      kp["w2"], kp["b2"],
      kp["w3"], kp["b3"])
    return out[:m]


# ------------------------ parameter initialization --------------------------
def _linear_init(key, fan_in, fan_out):
    # PyTorch nn.Linear default: U(-1/sqrt(fan_in), 1/sqrt(fan_in)); stored (in, out)
    kw, kb = jax.random.split(key)
    bound = 1.0 / jnp.sqrt(jnp.float32(fan_in))
    w = jax.random.uniform(kw, (fan_in, fan_out), jnp.float32, -bound, bound)
    b = jax.random.uniform(kb, (fan_out,), jnp.float32, -bound, bound)
    return w, b


def init_params(key):
    k_emb, k1, k2, k3 = jax.random.split(key, 4)
    emb = _linear_init(k_emb, CARD_DIM, CARD_EMBEDDING_SIZE)
    l1 = _linear_init(k1, INPUT_SIZE, HIDDEN_LAYERS[0])
    l2 = _linear_init(k2, HIDDEN_LAYERS[0], HIDDEN_LAYERS[1])
    l3 = _linear_init(k3, HIDDEN_LAYERS[1], ACTION_SPACE_SIZE)
    return emb, (l1, l2, l3)


def prepare_kernel_params(emb_params, mlp_params):
    """One-time padding / gathering / bf16 casting into kernel-friendly layouts."""
    w_emb, b_emb = emb_params
    (w1, b1), (w2, b2), (w3, b3) = mlp_params
    bf = jnp.bfloat16

    # Block-diagonal card-embedding weight: 28 copies of (17,3) on the diagonal,
    # zero-padded to (512, 128). Flattened card encodings @ w_bd == all flat embs.
    # TODO(synk): this matmul form is encoding-agnostic; if the real game card
    # encoding is a strict one-hot, it can be folded into W1 (one less MXU pass).
    w_bd = jnp.zeros((CARDS_PAD_K, EMB_PAD), jnp.float32)
    for c in range(N_CARDS):
        w_bd = w_bd.at[c * CARD_DIM:(c + 1) * CARD_DIM,
                       c * CARD_EMBEDDING_SIZE:(c + 1) * CARD_EMBEDDING_SIZE].set(w_emb)
    b_bd = jnp.zeros((1, EMB_PAD), jnp.float32).at[0, :N_EMB].set(
        jnp.tile(b_emb, N_CARDS))

    # Split W1 into rows multiplied by embeddings vs rows multiplied by scalars,
    # then stack them so layer 1 is a single (384, 128) weight.
    w1_e = jnp.zeros((EMB_PAD, HIDDEN), jnp.float32).at[:N_EMB, :].set(w1[_EMB_IDX])
    w1_s = jnp.zeros((SCAL_PAD_K, HIDDEN), jnp.float32).at[:N_SCAL, :].set(w1[_SCAL_IDX])
    w1_cat = jnp.concatenate([w1_e, w1_s], axis=0)                     # (384, 128)

    # Lane-dense output layer: zero-pad 41 -> 128.
    w3_p = jnp.zeros((HIDDEN, OUT_PAD), jnp.float32).at[:, :ACTION_SPACE_SIZE].set(w3)
    b3_p = jnp.zeros((1, OUT_PAD), jnp.float32).at[0, :ACTION_SPACE_SIZE].set(b3)

    return dict(w_bd=w_bd.astype(bf), b_bd=b_bd,
                w1=w1_cat.astype(bf), b1=b1.reshape(1, HIDDEN),
                w2=w2.astype(bf), b2=b2.reshape(1, HIDDEN),
                w3=w3_p.astype(bf), b3=b3_p)


# ------------------------------ model forward -------------------------------
def _pack_state(inputs):
    """Pack one game state into the two flat kernel inputs (cheap wrapper ops)."""
    (hand, f1, f2, own, f3, f4, opp, f5, f6, disc, f7, f8) = inputs
    cards = jnp.concatenate([hand, own, opp, disc], axis=0).reshape(-1)        # (476,)
    cards = jnp.concatenate(
        [cards, jnp.zeros((CARDS_PAD_K - CARDS_K,), jnp.float32)])             # (512,)
    scal = jnp.concatenate(
        [f1, f2, f3, f4, f5, f6, f7, f8,
         jnp.zeros((SCAL_PAD_K - N_SCAL,), jnp.float32)])                      # (256,)
    return cards.astype(jnp.bfloat16), scal.astype(jnp.bfloat16)


def model_forward(inputs, kernel_params):
    """Single game state (matches _MyModel1.forward semantics)."""
    cards, scal = _pack_state(inputs)
    out = fused_forward(cards[None, :], scal[None, :], kernel_params)
    return out[0, :ACTION_SPACE_SIZE]


def model_forward_batch(batched_inputs, kernel_params, *, tm_max=TM_MAX):
    """B game states in one fused, batch-gridded kernel call."""
    cards, scal = jax.vmap(_pack_state)(batched_inputs)
    out = fused_forward(cards, scal, kernel_params, tm_max=tm_max)
    return out[:, :ACTION_SPACE_SIZE]


# -------------------------- pure-JAX reference check ------------------------
def model_forward_ref(inputs, emb_params, mlp_params):
    (hand, f1, f2, own, f3, f4, opp, f5, f6, disc, f7, f8) = inputs
    w_emb, b_emb = emb_params

    def emb(c):
        return jax.nn.relu(c @ w_emb + b_emb).reshape(-1)

    x = jnp.concatenate((emb(hand), f1, f2, emb(own), f3, f4,
                         emb(opp), f5, f6, emb(disc), f7, f8))
    (w1, b1), (w2, b2), (w3, b3) = mlp_params
    x = jax.nn.relu(x @ w1 + b1)
    x = jax.nn.relu(x @ w2 + b2)
    return x @ w3 + b3


# ----------------------------------- main ------------------------------------
def make_inputs(key):
    ks = jax.random.split(key, 12)

    def ohe(k, n):
        idx = jax.random.randint(k, (n,), 0, CARD_DIM)
        return jax.nn.one_hot(idx, CARD_DIM, dtype=jnp.float32)

    return (
        ohe(ks[0], N_HAND),
        jax.random.normal(ks[1], (FEAT["norm_hand_val_diff_to_own_pile"],)),
        jax.random.bernoulli(ks[2], 0.5,
                             (FEAT["can_opponent_play_my_card"],)).astype(jnp.float32),
        ohe(ks[3], N_PILE),
        jax.random.uniform(ks[4], (FEAT["norm_own_pile_scores"],)),
        jax.random.uniform(ks[5], (1,)),
        ohe(ks[6], N_PILE),
        jax.random.uniform(ks[7], (FEAT["norm_opp_pile_scores"],)),
        jax.random.uniform(ks[8], (1,)),
        ohe(ks[9], N_PILE),
        jax.random.normal(ks[10], (FEAT["norm_discard_pile_val_diff_to_own_pile"],)),
        jax.random.uniform(ks[11], (1,)),
    )


if __name__ == "__main__":
    key = jax.random.PRNGKey(0)
    k_params, k_inputs = jax.random.split(key)
    emb_params, mlp_params = init_params(k_params)
    kparams = prepare_kernel_params(emb_params, mlp_params)

    ATOL, RTOL = 7.5e-2, 5e-2   # bf16 weights/activations vs f32 reference

    # --- single-state forward (original module semantics) ---
    inputs = make_inputs(k_inputs)
    out = jax.block_until_ready(model_forward(inputs, kparams))
    ref = model_forward_ref(inputs, emb_params, mlp_params)
    assert out.shape == (ACTION_SPACE_SIZE,)
    assert jnp.allclose(out, ref, atol=ATOL, rtol=RTOL), "single-state mismatch"

    # --- batched forward: 8 game states in ONE fused kernel call ---
    B = 8
    b_keys = jax.random.split(k_inputs, B)
    per_state = [make_inputs(k) for k in b_keys]
    batched_inputs = jax.tree_util.tree_map(lambda *xs: jnp.stack(xs), *per_state)
    out_b = jax.block_until_ready(model_forward_batch(batched_inputs, kparams))
    assert out_b.shape == (B, ACTION_SPACE_SIZE)
    for i in range(B):
        ref_i = model_forward_ref(per_state[i], emb_params, mlp_params)
        assert jnp.allclose(out_b[i], ref_i, atol=ATOL, rtol=RTOL), "batched mismatch"

    # --- ragged batch with a small block size: exercises the multi-step batch
    #     grid (VMEM-resident weights across steps) and tail padding ---
    B2 = 40
    b2_keys = jax.random.split(jax.random.PRNGKey(7), B2)
    per_state2 = [make_inputs(k) for k in b2_keys]
    batched_inputs2 = jax.tree_util.tree_map(lambda *xs: jnp.stack(xs), *per_state2)
    out_b2 = jax.block_until_ready(
        model_forward_batch(batched_inputs2, kparams, tm_max=16))
    assert out_b2.shape == (B2, ACTION_SPACE_SIZE)
    for i in range(0, B2, 7):
        ref_i = model_forward_ref(per_state2[i], emb_params, mlp_params)
        assert jnp.allclose(out_b2[i], ref_i, atol=ATOL, rtol=RTOL), "grid mismatch"

    print("KERNEL_OK")
</pallas_src>

<mosaic_0001>
module attributes {stable_mosaic.version = 11 : i64} {
  func.func @_fused_kernel(%arg0: i32, %arg1: memref<16x512xbf16, #tpu.memory_space<vmem>>, %arg2: memref<16x256xbf16, #tpu.memory_space<vmem>>, %arg3: memref<512x128xbf16, #tpu.memory_space<vmem>>, %arg4: memref<1x128xf32, #tpu.memory_space<vmem>>, %arg5: memref<384x128xbf16, #tpu.memory_space<vmem>>, %arg6: memref<1x128xf32, #tpu.memory_space<vmem>>, %arg7: memref<128x128xbf16, #tpu.memory_space<vmem>>, %arg8: memref<1x128xf32, #tpu.memory_space<vmem>>, %arg9: memref<128x128xbf16, #tpu.memory_space<vmem>>, %arg10: memref<1x128xf32, #tpu.memory_space<vmem>>, %arg11: memref<16x128xf32, #tpu.memory_space<vmem>>, %arg12: memref<16x384xbf16, #tpu.memory_space<vmem>>) attributes {dimension_semantics = [#tpu.dimension_semantics<parallel>], iteration_bounds = array<i64: 1>, scalar_prefetch = 0 : i64, scratch_operands = 1 : i64, tpu.core_type = #tpu.core_type<tc>, window_params = [{transform_indices = @transform_0, window_bounds = array<i64: 16, 512>}, {transform_indices = @transform_1, window_bounds = array<i64: 16, 256>}, {pipeline_mode = #tpu.pipeline_mode<synchronous>, transform_indices = @transform_2, window_bounds = array<i64: 512, 128>}, {pipeline_mode = #tpu.pipeline_mode<synchronous>, transform_indices = @transform_3, window_bounds = array<i64: 1, 128>}, {pipeline_mode = #tpu.pipeline_mode<synchronous>, transform_indices = @transform_4, window_bounds = array<i64: 384, 128>}, {pipeline_mode = #tpu.pipeline_mode<synchronous>, transform_indices = @transform_5, window_bounds = array<i64: 1, 128>}, {pipeline_mode = #tpu.pipeline_mode<synchronous>, transform_indices = @transform_6, window_bounds = array<i64: 128, 128>}, {pipeline_mode = #tpu.pipeline_mode<synchronous>, transform_indices = @transform_7, window_bounds = array<i64: 1, 128>}, {pipeline_mode = #tpu.pipeline_mode<synchronous>, transform_indices = @transform_8, window_bounds = array<i64: 128, 128>}, {pipeline_mode = #tpu.pipeline_mode<synchronous>, transform_indices = @transform_9, window_bounds = array<i64: 1, 128>}, {transform_indices = @transform_10, window_bounds = array<i64: 16, 128>}]} {
    %c0 = arith.constant 0 : index
    %c0_0 = arith.constant 0 : index
    %0 = vector.load %arg1[%c0, %c0_0] : memref<16x512xbf16, #tpu.memory_space<vmem>>, vector<16x512xbf16>
    %c0_1 = arith.constant 0 : index
    %c0_2 = arith.constant 0 : index
    %1 = vector.load %arg3[%c0_1, %c0_2] : memref<512x128xbf16, #tpu.memory_space<vmem>>, vector<512x128xbf16>
    %cst = arith.constant dense<0.000000e+00> : vector<16x128xf32>
    %2 = tpu.matmul %0, %1, %cst {dimension_numbers = #tpu.dot_dimension_numbers<[1], [0], [0], [1], [0, 0, 1, 1], [], []>} : vector<16x512xbf16>, vector<512x128xbf16>, vector<16x128xf32> -> vector<16x128xf32>
    %c0_3 = arith.constant 0 : index
    %c0_4 = arith.constant 0 : index
    %3 = vector.load %arg4[%c0_3, %c0_4] : memref<1x128xf32, #tpu.memory_space<vmem>>, vector<1x128xf32>
    %4 = vector.broadcast %3 : vector<1x128xf32> to vector<16x128xf32>
    %5 = arith.addf %2, %4 : vector<16x128xf32>
    %cst_5 = arith.constant 0.000000e+00 : f32
    %6 = vector.broadcast %cst_5 : f32 to vector<16x128xf32>
    %7 = arith.maximumf %5, %6 : vector<16x128xf32>
    %8 = arith.truncf %7 : vector<16x128xf32> to vector<16x128xbf16>
    %c0_6 = arith.constant 0 : index
    %c0_7 = arith.constant 0 : index
    %9 = vector.load %arg12[%c0_6, %c0_7] : memref<16x384xbf16, #tpu.memory_space<vmem>>, vector<16x128xbf16>
    tpu.vector_store %arg12[%c0_6, %c0_7], %8 {strides = array<i32>} : memref<16x384xbf16, #tpu.memory_space<vmem>>, vector<16x128xbf16>,
    %c0_8 = arith.constant 0 : index
    %c0_9 = arith.constant 0 : index
    %10 = vector.load %arg2[%c0_8, %c0_9] : memref<16x256xbf16, #tpu.memory_space<vmem>>, vector<16x256xbf16>
    %c0_10 = arith.constant 0 : index
    %c128 = arith.constant 128 : index
    %11 = vector.load %arg12[%c0_10, %c128] : memref<16x384xbf16, #tpu.memory_space<vmem>>, vector<16x256xbf16>
    tpu.vector_store %arg12[%c0_10, %c128], %10 {strides = array<i32>} : memref<16x384xbf16, #tpu.memory_space<vmem>>, vector<16x256xbf16>,
    %c0_11 = arith.constant 0 : index
    %c0_12 = arith.constant 0 : index
    %12 = vector.load %arg12[%c0_11, %c0_12] : memref<16x384xbf16, #tpu.memory_space<vmem>>, vector<16x384xbf16>
    %c0_13 = arith.constant 0 : index
    %c0_14 = arith.constant 0 : index
    %13 = vector.load %arg5[%c0_13, %c0_14] : memref<384x128xbf16, #tpu.memory_space<vmem>>, vector<384x128xbf16>
    %cst_15 = arith.constant dense<0.000000e+00> : vector<16x128xf32>
    %14 = tpu.matmul %12, %13, %cst_15 {dimension_numbers = #tpu.dot_dimension_numbers<[1], [0], [0], [1], [0, 0, 1, 1], [], []>} : vector<16x384xbf16>, vector<384x128xbf16>, vector<16x128xf32> -> vector<16x128xf32>
    %c0_16 = arith.constant 0 : index
    %c0_17 = arith.constant 0 : index
    %15 = vector.load %arg6[%c0_16, %c0_17] : memref<1x128xf32, #tpu.memory_space<vmem>>, vector<1x128xf32>
    %16 = vector.broadcast %15 : vector<1x128xf32> to vector<16x128xf32>
    %17 = arith.addf %14, %16 : vector<16x128xf32>
    %cst_18 = arith.constant 0.000000e+00 : f32
    %18 = vector.broadcast %cst_18 : f32 to vector<16x128xf32>
    %19 = arith.maximumf %17, %18 : vector<16x128xf32>
    %20 = arith.truncf %19 : vector<16x128xf32> to vector<16x128xbf16>
    %c0_19 = arith.constant 0 : index
    %c0_20 = arith.constant 0 : index
    %21 = vector.load %arg7[%c0_19, %c0_20] : memref<128x128xbf16, #tpu.memory_space<vmem>>, vector<128x128xbf16>
    %cst_21 = arith.constant dense<0.000000e+00> : vector<16x128xf32>
    %22 = tpu.matmul %20, %21, %cst_21 {dimension_numbers = #tpu.dot_dimension_numbers<[1], [0], [0], [1], [0, 0, 1, 1], [], []>} : vector<16x128xbf16>, vector<128x128xbf16>, vector<16x128xf32> -> vector<16x128xf32>
    %c0_22 = arith.constant 0 : index
    %c0_23 = arith.constant 0 : index
    %23 = vector.load %arg8[%c0_22, %c0_23] : memref<1x128xf32, #tpu.memory_space<vmem>>, vector<1x128xf32>
    %24 = vector.broadcast %23 : vector<1x128xf32> to vector<16x128xf32>
    %25 = arith.addf %22, %24 : vector<16x128xf32>
    %cst_24 = arith.constant 0.000000e+00 : f32
    %26 = vector.broadcast %cst_24 : f32 to vector<16x128xf32>
    %27 = arith.maximumf %25, %26 : vector<16x128xf32>
    %28 = arith.truncf %27 : vector<16x128xf32> to vector<16x128xbf16>
    %c0_25 = arith.constant 0 : index
    %c0_26 = arith.constant 0 : index
    %29 = vector.load %arg9[%c0_25, %c0_26] : memref<128x128xbf16, #tpu.memory_space<vmem>>, vector<128x128xbf16>
    %cst_27 = arith.constant dense<0.000000e+00> : vector<16x128xf32>
    %30 = tpu.matmul %28, %29, %cst_27 {dimension_numbers = #tpu.dot_dimension_numbers<[1], [0], [0], [1], [0, 0, 1, 1], [], []>} : vector<16x128xbf16>, vector<128x128xbf16>, vector<16x128xf32> -> vector<16x128xf32>
    %c0_28 = arith.constant 0 : index
    %c0_29 = arith.constant 0 : index
    %31 = vector.load %arg10[%c0_28, %c0_29] : memref<1x128xf32, #tpu.memory_space<vmem>>, vector<1x128xf32>
    %32 = vector.broadcast %31 : vector<1x128xf32> to vector<16x128xf32>
    %33 = arith.addf %30, %32 : vector<16x128xf32>
    %c0_30 = arith.constant 0 : index
    %c0_31 = arith.constant 0 : index
    %34 = vector.load %arg11[%c0_30, %c0_31] : memref<16x128xf32, #tpu.memory_space<vmem>>, vector<16x128xf32>
    tpu.vector_store %arg11[%c0_30, %c0_31], %33 {strides = array<i32>} : memref<16x128xf32, #tpu.memory_space<vmem>>, vector<16x128xf32>,
    return
  }
  func.func @transform_0(%arg0: i32) -> (i32, i32) {
    %c0_i32 = arith.constant 0 : i32
    %c0_i32_0 = arith.constant 0 : i32
    return %arg0, %c0_i32 : i32, i32
  }
  func.func @transform_1(%arg0: i32) -> (i32, i32) {
    %c0_i32 = arith.constant 0 : i32
    %c0_i32_0 = arith.constant 0 : i32
    return %arg0, %c0_i32 : i32, i32
  }
  func.func @transform_2(%arg0: i32) -> (i32, i32) {
    %c0_i32 = arith.constant 0 : i32
    %c0_i32_0 = arith.constant 0 : i32
    %c0_i32_1 = arith.constant 0 : i32
    return %c0_i32, %c0_i32_0 : i32, i32
  }
  func.func @transform_3(%arg0: i32) -> (i32, i32) {
    %c0_i32 = arith.constant 0 : i32
    %c0_i32_0 = arith.constant 0 : i32
    %c0_i32_1 = arith.constant 0 : i32
    return %c0_i32, %c0_i32_0 : i32, i32
  }
  func.func @transform_4(%arg0: i32) -> (i32, i32) {
    %c0_i32 = arith.constant 0 : i32
    %c0_i32_0 = arith.constant 0 : i32
    %c0_i32_1 = arith.constant 0 : i32
    return %c0_i32, %c0_i32_0 : i32, i32
  }
  func.func @transform_5(%arg0: i32) -> (i32, i32) {
    %c0_i32 = arith.constant 0 : i32
    %c0_i32_0 = arith.constant 0 : i32
    %c0_i32_1 = arith.constant 0 : i32
    return %c0_i32, %c0_i32_0 : i32, i32
  }
  func.func @transform_6(%arg0: i32) -> (i32, i32) {
    %c0_i32 = arith.constant 0 : i32
    %c0_i32_0 = arith.constant 0 : i32
    %c0_i32_1 = arith.constant 0 : i32
    return %c0_i32, %c0_i32_0 : i32, i32
  }
  func.func @transform_7(%arg0: i32) -> (i32, i32) {
    %c0_i32 = arith.constant 0 : i32
    %c0_i32_0 = arith.constant 0 : i32
    %c0_i32_1 = arith.constant 0 : i32
    return %c0_i32, %c0_i32_0 : i32, i32
  }
  func.func @transform_8(%arg0: i32) -> (i32, i32) {
    %c0_i32 = arith.constant 0 : i32
    %c0_i32_0 = arith.constant 0 : i32
    %c0_i32_1 = arith.constant 0 : i32
    return %c0_i32, %c0_i32_0 : i32, i32
  }
  func.func @transform_9(%arg0: i32) -> (i32, i32) {
    %c0_i32 = arith.constant 0 : i32
    %c0_i32_0 = arith.constant 0 : i32
    %c0_i32_1 = arith.constant 0 : i32
    return %c0_i32, %c0_i32_0 : i32, i32
  }
  func.func @transform_10(%arg0: i32) -> (i32, i32) {
    %c0_i32 = arith.constant 0 : i32
    %c0_i32_0 = arith.constant 0 : i32
    return %arg0, %c0_i32 : i32, i32
  }
}

</mosaic_0001>

<bundles_post_ra>
// kernel: tpu_custom_call.1
= control target key start
LH: loop header
LB: loop body
LE: loop exit
PB: predicated region body
PF: predicated region fallthrough
CT: control target
= control target key end

     0   :  { %15 = vsyncpa [#allocation4], 0  ;;  %s1751_s0 = inlined_call_operand.hbm [shape: bf16[16,512], index: 0, kind: input, shape index: {}]   ;;  %s1752_s1 = inlined_call_operand.hbm [shape: bf16[16,256], index: 1, kind: input, shape index: {}]   ;;  %s1753_s2 = inlined_call_operand.hbm [shape: bf16[512,128], index: 2, kind: input, shape index: {}]   ;;  %s1754_s3 = inlined_call_operand.vmem [shape: f32[1,128], index: 3, kind: input, shape index: {}]   ;;  %s1755_s4 = inlined_call_operand.hbm [shape: bf16[384,128], index: 4, kind: input, shape index: {}]   ;;  %s1756_s5 = inlined_call_operand.vmem [shape: f32[1,128], index: 5, kind: input, shape index: {}]   ;;  %s1757_s6 = inlined_call_operand.hbm [shape: bf16[128,128], index: 6, kind: input, shape index: {}]   ;;  %s1758_s7 = inlined_call_operand.vmem [shape: f32[1,128], index: 7, kind: input, shape index: {}]   ;;  %s1759_s8 = inlined_call_operand.hbm [shape: bf16[128,128], index: 8, kind: input, shape index: {}]   ;;  %s1760_s9 = inlined_call_operand.vmem [shape: f32[1,128], index: 9, kind: input, shape index: {}]   ;;  %s1761_s10 = inlined_call_operand.hbm [shape: f32[16,128], index: 10, kind: output, shape index: {}]  }
   0x1   :  { %16 = vsyncpa [#allocation7], 0 }
   0x2   :  { %17 = vsyncpa [#allocation10], 0 }
   0x3   :  { %18 = vsyncpa [#allocation13], 0 }
   0x4   :  { %19 = vsyncpa [#allocation5], 0  ;;  %s1537_s13 = smov [#allocation6]   ;;  %s1373_s17 = scalar_lea.hbm %s1752_s1, 256 }
   0x5   :  { %s37_s14 = sshll.u32 %s1537_s13, 4  ;;  %p1374_p0 = scmp.ne.s32.totalorder %s1752_s1, %s1373_s17  ;;  %s38_s14 = int_to_ptr.vmem [resolvable:$true] %s37_s14 }
   0x6   :  { %p1377_p1 = scmp.lt.u32.totalorder %s1373_s17, %s1752_s1 }
   0x8   :  { %p1379_p2 = pnand %p1377_p1, %p1374_p0 }
   0xa   :  { %1382 = shalt.err (!%p1379_p2)
}
   0xb   :  { %s1383_s22 = scalar_lea.vmem %s38_s14, 256  ;;  %p1388_p4 = scmp.lt.s32.totalorder %s38_s14, %s38_s14 }
   0xc   :  { %p1384_p3 = scmp.ne.s32.totalorder %s38_s14, %s1383_s22  ;;  %p1389_p5 = scmp.lt.s32.totalorder %s1383_s22, %s1383_s22 }
   0xe   :  { %p1390_p6 = por %p1389_p5, %p1388_p4 }
  0x10   :  { %p1391_p7 = pnand %p1390_p6, %p1384_p3 }
  0x12   :  { %1394 = shalt.err (!%p1391_p7)
}
  0x13   :  { %s1538_s23 = smov 128   ;;  %s1539_s24 = smov 8  }
  0x14   :  { %43 = dma.hbm_to_vmem [thread:$0]  %s1752_s1, 256, %s38_s14, [#allocation7], %s1538_s23, %s1538_s23, %s1539_s24  }
  0x15   :  { %s1540_s27 = smov [#allocation9]   ;;  %s1541_s29 = smov [#allocation3]  }
  0x16   :  { %s63_s28 = sshll.u32 %s1540_s27, 4  ;;  %s25_s30 = sshll.u32 %s1541_s29, 4  ;;  %s64_s28 = int_to_ptr.vmem [resolvable:$true] %s63_s28  ;;  %s26_s30 = int_to_ptr.vmem [resolvable:$true] %s25_s30 }
  0x17   :  { %s1395_s13 = scalar_lea.hbm %s1755_s4, 3072 }
  0x18   :  { %p1396_p8 = scmp.ne.s32.totalorder %s1755_s4, %s1395_s13  ;;  %p1399_p9 = scmp.lt.u32.totalorder %s1395_s13, %s1755_s4 }
  0x1a   :  { %p1401_p10 = pnand %p1399_p9, %p1396_p8 }
  0x1c   :  { %1404 = shalt.err (!%p1401_p10)
}
  0x1d   :  { %s1405_s1 = scalar_lea.vmem %s64_s28, 3072  ;;  %p1410_p12 = scmp.lt.s32.totalorder %s64_s28, %s64_s28 }
  0x1e   :  { %p1406_p11 = scmp.ne.s32.totalorder %s64_s28, %s1405_s1  ;;  %p1411_p13 = scmp.lt.s32.totalorder %s1405_s1, %s1405_s1 }
  0x20   :  { %p1412_p0 = por %p1411_p13, %p1410_p12 }
  0x22   :  { %p1413_p1 = pnand %p1412_p0, %p1406_p11 }
  0x24   :  { %1416 = shalt.err (!%p1413_p1)
}
  0x25   :  { %s1542_s14 = smov 64   ;;  %s1543_s19 = smov 4  }
  0x26   :  { %69 = dma.hbm_to_vmem [thread:$0]  %s1755_s4, 3072, %s64_s28, [#allocation10], %s1542_s14, %s1542_s14, %s1543_s19  }
  0x27   :  { %s1417_s26 = scalar_lea.hbm %s1751_s0, 512 }
  0x28   :  { %p1418_p2 = scmp.ne.s32.totalorder %s1751_s0, %s1417_s26  ;;  %p1421_p3 = scmp.lt.u32.totalorder %s1417_s26, %s1751_s0 }
  0x2a   :  { %p1423_p4 = pnand %p1421_p3, %p1418_p2 }
  0x2c   :  { %1426 = shalt.err (!%p1423_p4)
}
  0x2d   :  { %s1427_s13 = scalar_lea.vmem %s26_s30, 512  ;;  %p1432_p6 = scmp.lt.s32.totalorder %s26_s30, %s26_s30 }
  0x2e   :  { %p1428_p5 = scmp.ne.s32.totalorder %s26_s30, %s1427_s13  ;;  %p1433_p7 = scmp.lt.s32.totalorder %s1427_s13, %s1427_s13 }
  0x30   :  { %p1434_p8 = por %p1433_p7, %p1432_p6 }
  0x32   :  { %p1435_p9 = pnand %p1434_p8, %p1428_p5 }
  0x34   :  { %1438 = shalt.err (!%p1435_p9)
}
  0x35   :  { %s1544_s4 = smov 256   ;;  %s1545_s28 = smov 16  }
  0x36   :  { %31 = dma.hbm_to_vmem [thread:$0]  %s1751_s0, 512, %s26_s30, [#allocation4], %s1544_s4, %s1544_s4, %s1545_s28  }
  0x37   :  { %s1546_s17 = smov [#allocation8]   ;;  %s1547_s1 = smov [#allocation11]  }
  0x38   :  { %s49_s18 = sshll.u32 %s1546_s17, 4  ;;  %s77_s20 = sshll.u32 %s1547_s1, 4  ;;  %s50_s18 = int_to_ptr.vmem [resolvable:$true] %s49_s18  ;;  %s78_s20 = int_to_ptr.vmem [resolvable:$true] %s77_s20 }
  0x39   :  { %s1439_s25 = scalar_lea.hbm %s1753_s2, 4096 }
  0x3a   :  { %p1440_p10 = scmp.ne.s32.totalorder %s1753_s2, %s1439_s25  ;;  %p1443_p11 = scmp.lt.u32.totalorder %s1439_s25, %s1753_s2 }
  0x3c   :  { %p1445_p12 = pnand %p1443_p11, %p1440_p10 }
  0x3e   :  { %1448 = shalt.err (!%p1445_p12)
}
  0x3f   :  { %s1449_s0 = scalar_lea.vmem %s50_s18, 4096  ;;  %p1454_p0 = scmp.lt.s32.totalorder %s50_s18, %s50_s18 }
  0x40   :  { %p1450_p13 = scmp.ne.s32.totalorder %s50_s18, %s1449_s0  ;;  %p1455_p1 = scmp.lt.s32.totalorder %s1449_s0, %s1449_s0 }
  0x42   :  { %p1456_p2 = por %p1455_p1, %p1454_p0 }
  0x44   :  { %p1457_p3 = pnand %p1456_p2, %p1450_p13 }
  0x46   :  { %1460 = shalt.err (!%p1457_p3)
}
  0x47   :  { %55 = dma.hbm_to_vmem [thread:$0]  %s1753_s2, 4096, %s50_s18, [#allocation7], %s1542_s14, %s1542_s14, %s1543_s19  }
  0x48   :  { %s1461_s28 = scalar_lea.hbm %s1757_s6, 1024 }
  0x49   :  { %p1462_p4 = scmp.ne.s32.totalorder %s1757_s6, %s1461_s28  ;;  %p1465_p5 = scmp.lt.u32.totalorder %s1461_s28, %s1757_s6 }
  0x4b   :  { %p1467_p6 = pnand %p1465_p5, %p1462_p4 }
  0x4d   :  { %1470 = shalt.err (!%p1467_p6)
}
  0x4e   :  { %s1471_s21 = scalar_lea.vmem %s78_s20, 1024  ;;  %p1476_p8 = scmp.lt.s32.totalorder %s78_s20, %s78_s20 }
  0x4f   :  { %p1472_p7 = scmp.ne.s32.totalorder %s78_s20, %s1471_s21  ;;  %p1477_p9 = scmp.lt.s32.totalorder %s1471_s21, %s1471_s21 }
  0x51   :  { %p1478_p10 = por %p1477_p9, %p1476_p8 }
  0x53   :  { %p1479_p11 = pnand %p1478_p10, %p1472_p7 }
  0x55   :  { %1482 = shalt.err (!%p1479_p11)
}
  0x56   :  { %83 = dma.hbm_to_vmem [thread:$0]  %s1757_s6, 1024, %s78_s20, [#allocation10], %s1542_s14, %s1542_s14, %s1543_s19  }
  0x57   :  { %s1548_s22 = smov [#allocation12]   ;;  %s1483_s29 = scalar_lea.hbm %s1759_s8, 1024 }
  0x58   :  { %s91_s25 = sshll.u32 %s1548_s22, 4  ;;  %p1484_p12 = scmp.ne.s32.totalorder %s1759_s8, %s1483_s29  ;;  %s92_s25 = int_to_ptr.vmem [resolvable:$true] %s91_s25 }
  0x59   :  { %p1487_p13 = scmp.lt.u32.totalorder %s1483_s29, %s1759_s8 }
  0x5b   :  { %p1489_p0 = pnand %p1487_p13, %p1484_p12 }
  0x5d   :  { %1492 = shalt.err (!%p1489_p0)
}
  0x5e   :  { %s1493_s13 = scalar_lea.vmem %s92_s25, 1024  ;;  %p1498_p2 = scmp.lt.s32.totalorder %s92_s25, %s92_s25 }
  0x5f   :  { %p1494_p1 = scmp.ne.s32.totalorder %s92_s25, %s1493_s13  ;;  %p1499_p3 = scmp.lt.s32.totalorder %s1493_s13, %s1493_s13 }
  0x61   :  { %p1500_p4 = por %p1499_p3, %p1498_p2 }
  0x63   :  { %p1501_p5 = pnand %p1500_p4, %p1494_p1 }
  0x65   :  { %1504 = shalt.err (!%p1501_p5)
}
  0x66   :  { %97 = dma.hbm_to_vmem [thread:$0]  %s1759_s8, 1024, %s92_s25, [#allocation13], %s1542_s14, %s1542_s14, %s1543_s19  }
  0x67   :  { %1527 = dma.done.wait [#allocation4], 512  }
  0x68   :  { %1528 = vsyncadd [#allocation4], 4294966784 }
  0x69   :  { %1529 = dma.done.wait [#allocation7], 4352  }
  0x6a   :  { %1530 = vsyncadd [#allocation7], 4294962944 }
  0x6b   :  { %1531 = dma.done.wait [#allocation10], 4096  }
  0x6c   :  { %1532 = vsyncadd [#allocation10], 4294963200 }
  0x6d   :  { %1533 = dma.done.wait [#allocation13], 1024  }
  0x6e   :  { %1534 = vsyncadd [#allocation13], 4294966272  ;;  %v1292_v0 = vld [vmem:[#allocation8 + $0x40] sm:$0xff]   ;;  %v1296_v4 = vld [vmem:[#allocation8 + $0x48] sm:$0xff]   ;;  %v1549_v36 = vmov 0.0   ;;  %vm1550_vm0 = vmmov 0  }
  0x6f   :  { %v1293_v1 = vld [vmem:[#allocation8 + $0xc0] sm:$0xff]   ;;  %1124 = vmatprep.subr.bf16.mxu0 %v1292_v0  ;;  %v1297_v5 = vld [vmem:[#allocation8 + $0xc8] sm:$0xff]   ;;  %v1300_v8 = vld [vmem:[#allocation8 + $0x50] sm:$0xff]   ;;  %s1551_s16 = smov [#allocation14]  }
  0x70   :  { %v1294_v2 = vld [vmem:[#allocation8] sm:$0xff]   ;;  %1146 = vmatprep.subr.bf16.mxu1 %v1293_v1  ;;  %v1298_v6 = vld [vmem:[#allocation8 + $0x8] sm:$0xff]   ;;  %v1301_v9 = vld [vmem:[#allocation8 + $0xd0] sm:$0xff]   ;;  %s1027_s17 = sshll.u32 %s1551_s16, 4  ;;  %s1028_s17 = int_to_ptr.vmem [resolvable:$true] %s1027_s17 }
  0x71   :  { %v1295_v3 = vld [vmem:[#allocation8 + $0x80] sm:$0xff]   ;;  %1125 = vmatpush3.bf16.msra.mxu0 %v1294_v2  ;;  %v1299_v7 = vld [vmem:[#allocation8 + $0x88] sm:$0xff]   ;;  %v1302_v10 = vld [vmem:[#allocation8 + $0x10] sm:$0xff]   ;;  %p1510_p7 = scmp.lt.s32.totalorder %s1028_s17, %s1028_s17 }
  0x72   :  { %1147 = vmatpush3.bf16.msra.mxu1 %v1295_v3  ;;  %1126 = vmatprep.subr.bf16.mxu0 %v1296_v4  ;;  %v1303_v11 = vld [vmem:[#allocation8 + $0x90] sm:$0xff]   ;;  %v1304_v12 = vld [vmem:[#allocation8 + $0x58] sm:$0xff]   ;;  %v1308_v16 = vld [vmem:[#allocation8 + $0x60] sm:$0xff]  }
  0x73   :  { %1148 = vmatprep.subr.bf16.mxu1 %v1297_v5  ;;  %v1305_v13 = vld [vmem:[#allocation8 + $0xd8] sm:$0xff]   ;;  %v1309_v17 = vld [vmem:[#allocation8 + $0xe0] sm:$0xff]   ;;  %v1312_v20 = vld [vmem:[#allocation8 + $0x68] sm:$0xff]  }
  0x74   :  { %v1306_v14 = vld [vmem:[#allocation8 + $0x18] sm:$0xff]   ;;  %v1310_v18 = vld [vmem:[#allocation8 + $0x20] sm:$0xff]   ;;  %v1313_v21 = vld [vmem:[#allocation8 + $0xe8] sm:$0xff]  }
  0x75   :  { %1127 = vmatpush3.bf16.msra.mxu0 %v1298_v6  ;;  %v1307_v15 = vld [vmem:[#allocation8 + $0x98] sm:$0xff]   ;;  %v1311_v19 = vld [vmem:[#allocation8 + $0xa0] sm:$0xff]   ;;  %v1314_v22 = vld [vmem:[#allocation8 + $0x28] sm:$0xff]  }
  0x76   :  { %1149 = vmatpush3.bf16.msra.mxu1 %v1299_v7  ;;  %1128 = vmatprep.subr.bf16.mxu0 %v1300_v8  ;;  %v1315_v23 = vld [vmem:[#allocation8 + $0xa8] sm:$0xff]   ;;  %v1316_v24 = vld [vmem:[#allocation8 + $0x70] sm:$0xff]   ;;  %v1320_v28 = vld [vmem:[#allocation8 + $0x78] sm:$0xff]  }
  0x77   :  { %1150 = vmatprep.subr.bf16.mxu1 %v1301_v9  ;;  %v1317_v25 = vld [vmem:[#allocation8 + $0xf0] sm:$0xff]   ;;  %v1321_v29 = vld [vmem:[#allocation8 + $0xf8] sm:$0xff]   ;;  %v1330_v37 = vld [vmem:[#allocation9 + $0x40] sm:$0xff]  }
  0x78   :  { %v1318_v26 = vld [vmem:[#allocation8 + $0x30] sm:$0xff]   ;;  %v1322_v30 = vld [vmem:[#allocation8 + $0x38] sm:$0xff]   ;;  %v1331_v38 = vld [vmem:[#allocation9] sm:$0xff]  }
  0x79   :  { %1129 = vmatpush3.bf16.msra.mxu0 %v1302_v10  ;;  %v1319_v27 = vld [vmem:[#allocation8 + $0xb0] sm:$0xff]   ;;  %v1323_v31 = vld [vmem:[#allocation8 + $0xb8] sm:$0xff]   ;;  %v1332_v39 = vld [vmem:[#allocation9 + $0x80] sm:$0xff]  }
  0x7a   :  { %1151 = vmatpush3.bf16.msra.mxu1 %v1303_v11  ;;  %1130 = vmatprep.subr.bf16.mxu0 %v1304_v12  ;;  %v1324_v32 = vld [vmem:[#allocation3] ss:$16 sps:$4 sm:$0xff]   ;;  %v1326_v33 = vld [vmem:[#allocation3 + $0x4] ss:$16 sps:$4 sm:$0xff]   ;;  %v1327_v34 = vld [vmem:[#allocation3 + $0x8] ss:$16 sps:$4 sm:$0xff]  }
  0x7b   :  { %1152 = vmatprep.subr.bf16.mxu1 %v1305_v13  ;;  %v1329_v35 = vld [vmem:[#allocation3 + $0xc] ss:$16 sps:$4 sm:$0xff]   ;;  %438 = vmatprep.mubr.bf16.mxu0 %v1326_v33  ;;  %v1336_v43 = vld [vmem:[#allocation9 + $0x50] sm:$0xff]   ;;  %v1342_v49 = vld [vmem:[#allocation9 + $0x60] sm:$0xff]  }
  0x7c   :  { %479 = vmatprep.mubr.bf16.mxu1 %v1329_v35  ;;  %v1333_v40 = vld [vmem:[#allocation9 + $0x48] sm:$0xff]   ;;  %v1337_v44 = vld [vmem:[#allocation9 + $0x10] sm:$0xff]   ;;  %v1339_v46 = vld [vmem:[#allocation9 + $0x58] sm:$0xff]  }
  0x7d   :  { %1131 = vmatpush3.bf16.msra.mxu0 %v1306_v14  ;;  %v1334_v41 = vld [vmem:[#allocation9 + $0x8] sm:$0xff]   ;;  %v1338_v45 = vld [vmem:[#allocation9 + $0x90] sm:$0xff]   ;;  %v1340_v47 = vld [vmem:[#allocation9 + $0x18] sm:$0xff]  }
  0x7e   :  { %1153 = vmatpush3.bf16.msra.mxu1 %v1307_v15  ;;  %1132 = vmatprep.subr.bf16.mxu0 %v1308_v16  ;;  %v1335_v42 = vld [vmem:[#allocation9 + $0x88] sm:$0xff]   ;;  %v1341_v48 = vld [vmem:[#allocation9 + $0x98] sm:$0xff]   ;;  %v1343_v50 = vld [vmem:[#allocation9 + $0x20] sm:$0xff]  }
  0x7f   :  { %1154 = vmatprep.subr.bf16.mxu1 %v1309_v17  ;;  %v1344_v51 = vld [vmem:[#allocation9 + $0xa0] sm:$0xff]   ;;  %v1345_v52 = vld [vmem:[#allocation9 + $0x68] sm:$0xff]   ;;  %v1348_v55 = vld [vmem:[#allocation9 + $0x70] sm:$0xff]  }
  0x80   :  { %v1346_v53 = vld [vmem:[#allocation9 + $0x28] sm:$0xff]   ;;  %v1349_v56 = vld [vmem:[#allocation9 + $0x30] sm:$0xff]   ;;  %v1351_v58 = vld [vmem:[#allocation9 + $0x78] sm:$0xff]  }
  0x81   :  { %1133 = vmatpush3.bf16.msra.mxu0 %v1310_v18  ;;  %v1347_v54 = vld [vmem:[#allocation9 + $0xa8] sm:$0xff]   ;;  %v1350_v57 = vld [vmem:[#allocation9 + $0xb0] sm:$0xff]   ;;  %v1352_v59 = vld [vmem:[#allocation9 + $0x38] sm:$0xff]  }
  0x82   :  { %1155 = vmatpush3.bf16.msra.mxu1 %v1311_v19  ;;  %1134 = vmatprep.subr.bf16.mxu0 %v1312_v20  ;;  %v1353_v60 = vld [vmem:[#allocation6] ss:$8 sps:$4 sm:$0xff]   ;;  %v1355_v62 = vld [vmem:[#allocation6 + $0x4] ss:$8 sps:$4 sm:$0xff]   ;;  %v1357_v18 = vld [vmem:[#allocation11] sm:$0xff]  }
  0x83   :  { %1156 = vmatprep.subr.bf16.mxu1 %v1313_v21  ;;  %v1356_v61 = vld [vmem:[#allocation9 + $0xb8] sm:$0xff]   ;;  %v1042_v1 = vld [vmem:[%s1754_s3] ss:$0 sm:$0xff]  ;;  %v1358_v20 = vld [vmem:[#allocation11 + $0x8] sm:$0xff]  }
  0x84   :  { %v1359_v21 = vld [vmem:[#allocation11 + $0x10] sm:$0xff]   ;;  %v1369_v35 = vld [vmem:[#allocation12 + $0x20] sm:$0xff]  }
  0x85   :  { %1135 = vmatpush3.bf16.msra.mxu0 %v1314_v22  ;;  %v1360_v22 = vld [vmem:[#allocation11 + $0x18] sm:$0xff]   ;;  %v1367_v33 = vld [vmem:[#allocation12 + $0x10] sm:$0xff]  }
  0x86   :  { %1157 = vmatpush3.bf16.msra.mxu1 %v1315_v23  ;;  %1136 = vmatprep.subr.bf16.mxu0 %v1316_v24  ;;  %v1361_v23 = vld [vmem:[#allocation11 + $0x20] sm:$0xff]   ;;  %v1362_v24 = vld [vmem:[#allocation11 + $0x28] sm:$0xff]  }
  0x87   :  { %1158 = vmatprep.subr.bf16.mxu1 %v1317_v25 }
  0x89   :  { %1137 = vmatpush3.bf16.msra.mxu0 %v1318_v26 }
  0x8a   :  { %1159 = vmatpush3.bf16.msra.mxu1 %v1319_v27  ;;  %1138 = vmatprep.subr.bf16.mxu0 %v1320_v28 }
  0x8b   :  { %1160 = vmatprep.subr.bf16.mxu1 %v1321_v29  ;;  %v1363_v29 = vld [vmem:[#allocation11 + $0x30] sm:$0xff]  }
  0x8d   :  { %1139 = vmatpush3.bf16.msra.mxu0 %v1322_v30  ;;  %v1364_v30 = vld [vmem:[#allocation11 + $0x38] sm:$0xff]  }
  0x8e   :  { %1161 = vmatpush3.bf16.msra.mxu1 %v1323_v31  ;;  %1168 = vmatprep.subr.bf16.mxu0 %v1330_v37  ;;  %v1365_v31 = vld [vmem:[#allocation12] sm:$0xff]   ;;  %v1370_v37 = vld [vmem:[#allocation12 + $0x28] sm:$0xff]  }
  0x8f   :  { %1217 = vmatprep.subr.bf16.mxu1 %v1549_v36 }
  0x90   :  { %439 = vmatmul.mubr.bf16.vlgmr.msra.gmra.mrb[0].mxu0 %v1324_v32  ;;  %v1366_v32 = vld [vmem:[#allocation12 + $0x8] sm:$0xff]  }
  0x91   :  { %480 = vmatmul.mubr.bf16.vlgmr.msra.gmra.mrb[0].mxu1 %v1327_v34  ;;  %1169 = vmatpush3.bf16.msra.mxu0 %v1331_v38  ;;  %v1368_v34 = vld [vmem:[#allocation12 + $0x18] sm:$0xff]  }
  0x92   :  { %1218 = vmatpush3.bf16.msra.mxu1 %v1332_v39  ;;  %1170 = vmatprep.subr.bf16.mxu0 %v1333_v40  ;;  %v1081_v40 = vld [vmem:[%s1756_s5] ss:$0 sm:$0xff] }
  0x93   :  { %1219 = vmatprep.subr.bf16.mxu1 %v1549_v36  ;;  %740 = vmatprep.mubr.bf16.mxu0 %v1353_v60 }
  0x94   :  { %1233 = vmatprep.mubr.msk.bf16.mxu1 %vm1550_vm0, %v1549_v36 }
  0x95   :  { %1171 = vmatpush3.bf16.msra.mxu0 %v1334_v41 }
  0x96   :  { %1220 = vmatpush3.bf16.msra.mxu1 %v1335_v42  ;;  %1172 = vmatprep.subr.bf16.mxu0 %v1336_v43 }
  0x97   :  { %1221 = vmatprep.subr.bf16.mxu1 %v1549_v36 }
  0x99   :  { %1173 = vmatpush3.bf16.msra.mxu0 %v1337_v44 }
  0x9a   :  { %1222 = vmatpush3.bf16.msra.mxu1 %v1338_v45  ;;  %1174 = vmatprep.subr.bf16.mxu0 %v1339_v46 }
  0x9b   :  { %1223 = vmatprep.subr.bf16.mxu1 %v1549_v36 }
  0x9d   :  { %1175 = vmatpush3.bf16.msra.mxu0 %v1340_v47 }
  0x9e   :  { %1224 = vmatpush3.bf16.msra.mxu1 %v1341_v48  ;;  %1176 = vmatprep.subr.bf16.mxu0 %v1342_v49 }
  0x9f   :  { %1225 = vmatprep.subr.bf16.mxu1 %v1549_v36 }
  0xa1   :  { %1177 = vmatpush3.bf16.msra.mxu0 %v1343_v50 }
  0xa2   :  { %1226 = vmatpush3.bf16.msra.mxu1 %v1344_v51  ;;  %1178 = vmatprep.subr.bf16.mxu0 %v1345_v52  ;;  %v1371_v52 = vld [vmem:[#allocation12 + $0x30] sm:$0xff]  }
  0xa3   :  { %1227 = vmatprep.subr.bf16.mxu1 %v1549_v36 }
  0xa5   :  { %1179 = vmatpush3.bf16.msra.mxu0 %v1346_v53  ;;  %v1372_v53 = vld [vmem:[#allocation12 + $0x38] sm:$0xff]  }
  0xa6   :  { %1228 = vmatpush3.bf16.msra.mxu1 %v1347_v54  ;;  %1180 = vmatprep.subr.bf16.mxu0 %v1348_v55  ;;  %v1106_v54 = vld [vmem:[%s1758_s7] ss:$0 sm:$0xff]  ;;  %s1505_s7 = scalar_lea.vmem %s1028_s17, 256 }
  0xa7   :  { %1229 = vmatprep.subr.bf16.mxu1 %v1549_v36  ;;  %p1506_p6 = scmp.ne.s32.totalorder %s1028_s17, %s1505_s7  ;;  %p1511_p8 = scmp.lt.s32.totalorder %s1505_s7, %s1505_s7 }
  0xa9   :  { %1181 = vmatpush3.bf16.msra.mxu0 %v1349_v56  ;;  %p1512_p9 = por %p1511_p8, %p1510_p7 }
  0xaa   :  { %1230 = vmatpush3.bf16.msra.mxu1 %v1350_v57  ;;  %1182 = vmatprep.subr.bf16.mxu0 %v1351_v58 }
  0xab   :  { %1231 = vmatprep.subr.bf16.mxu1 %v1549_v36  ;;  %p1513_p10 = pnand %p1512_p9, %p1506_p6 }
  0xad   :  { %1183 = vmatpush3.bf16.msra.mxu0 %v1352_v59 }
  0xae   :  { %1237 = vmatprep.subr.bf16.mxu0 %v1549_v36  ;;  %1232 = vmatpush3.bf16.msra.mxu1 %v1356_v61 }
  0xaf   :  { %1257 = vmatprep.subr.bf16.mxu1 %v1549_v36 }
  0xb1   :  { %1234 = vmatmul.mubr.bf16.vlgmr.msra.gmra.mrb[4].mxu1 %v1355_v62 }
  0xb2   :  { %1273 = vmatprep.mubr.msk.bf16.mxu1 %vm1550_vm0, %v1549_v36  ;;  %1258 = vmatpush3.bf16.msra.mxu1 %v1365_v31 }
  0xb3   :  { %1259 = vmatprep.subr.bf16.mxu1 %v1549_v36 }
  0xb6   :  { %1260 = vmatpush3.bf16.msra.mxu1 %v1366_v32 }
  0xb7   :  { %1261 = vmatprep.subr.bf16.mxu1 %v1549_v36 }
  0xba   :  { %1262 = vmatpush3.bf16.msra.mxu1 %v1367_v33 }
  0xbb   :  { %1263 = vmatprep.subr.bf16.mxu1 %v1549_v36 }
  0xbe   :  { %1264 = vmatpush3.bf16.msra.mxu1 %v1368_v34 }
  0xbf   :  { %1265 = vmatprep.subr.bf16.mxu1 %v1549_v36 }
  0xc2   :  { %1266 = vmatpush3.bf16.msra.mxu1 %v1369_v35 }
  0xc3   :  { %1267 = vmatprep.subr.bf16.mxu1 %v1549_v36 }
  0xc6   :  { %1268 = vmatpush3.bf16.msra.mxu1 %v1370_v37 }
  0xc7   :  { %1269 = vmatprep.subr.bf16.mxu1 %v1549_v36 }
  0xca   :  { %1270 = vmatpush3.bf16.msra.mxu1 %v1371_v52 }
  0xcb   :  { %1271 = vmatprep.subr.bf16.mxu1 %v1549_v36 }
  0xce   :  { %1272 = vmatpush3.bf16.msra.mxu1 %v1372_v53 }
 0x163   :  { %v1140_v63 = vpop.f32.mrb[0].mxu0 }
 0x164   :  { %v1162_v0 = vpop.f32.mrb[0].mxu1  ;;  %v1141_v2 = vpop.f32.mrb[1].mxu0 }
 0x165   :  { %v1142_v3 = vadd.f32 %v1141_v2, %v1140_v63  ;;  %v1163_v4 = vpop.f32.mrb[1].mxu1  ;;  %v1143_v5 = vpop.f32.mrb[2].mxu0 }
 0x166   :  { %v1164_v6 = vadd.f32 %v1163_v4, %v1162_v0  ;;  %v1165_v7 = vpop.f32.mrb[2].mxu1  ;;  %v1144_v8 = vpop.f32.mrb[3].mxu0 }
 0x167   :  { %v441_v9 = vadd.f32 %v1142_v3, %v1042_v1  ;;  %v1145_v10 = vadd.f32 %v1144_v8, %v1143_v5  ;;  %v1166_v11 = vpop.f32.mrb[3].mxu1 }
 0x168   :  { %v1167_v12 = vadd.f32 %v1166_v11, %v1165_v7 }
 0x169   :  { %v482_v13 = vadd.f32 %v1164_v6, %v441_v9  ;;  %v444_v14 = vadd.f32 %v1145_v10, %v1042_v1 }
 0x16b   :  { %v485_v15 = vadd.f32 %v1167_v12, %v444_v14  ;;  %v488_v16 = vmax.f32 %v482_v13, 0.0 }
 0x16d   :  { %v489_v17 = vmax.f32 %v485_v15, 0.0 }
 0x16f   :  { %v490_v19 = vpack.c.bf16 %v489_v17, %v488_v16 }
 0x171   :  { %741 = vmatmul.mubr.bf16.vlgmr.msra.gmra.mrb[4].mxu0 %v490_v19 }
 0x172   :  { %1238 = vmatpush3.bf16.msra.mxu0 %v1357_v18  ;;  %1253 = vmatprep.mubr.msk.bf16.mxu0 %vm1550_vm0, %v1549_v36 }
 0x173   :  { %1239 = vmatprep.subr.bf16.mxu0 %v1549_v36 }
 0x176   :  { %1240 = vmatpush3.bf16.msra.mxu0 %v1358_v20 }
 0x177   :  { %1241 = vmatprep.subr.bf16.mxu0 %v1549_v36 }
 0x17a   :  { %1242 = vmatpush3.bf16.msra.mxu0 %v1359_v21 }
 0x17b   :  { %1243 = vmatprep.subr.bf16.mxu0 %v1549_v36 }
 0x17e   :  { %1244 = vmatpush3.bf16.msra.mxu0 %v1360_v22 }
 0x17f   :  { %1245 = vmatprep.subr.bf16.mxu0 %v1549_v36 }
 0x182   :  { %1246 = vmatpush3.bf16.msra.mxu0 %v1361_v23 }
 0x183   :  { %1247 = vmatprep.subr.bf16.mxu0 %v1549_v36 }
 0x184   :  { %v783_v25 = vpop.f32.mrb[4].mxu1 }
 0x185   :  { %v1235_v26 = vpop.f32.mrb[5].mxu1 }
 0x186   :  { %1248 = vmatpush3.bf16.msra.mxu0 %v1362_v24  ;;  %v786_v27 = vpop.f32.mrb[6].mxu1 }
 0x187   :  { %1249 = vmatprep.subr.bf16.mxu0 %v1549_v36  ;;  %v1236_v28 = vpop.f32.mrb[7].mxu1 }
 0x18a   :  { %1250 = vmatpush3.bf16.msra.mxu0 %v1363_v29 }
 0x18b   :  { %1251 = vmatprep.subr.bf16.mxu0 %v1549_v36  ;;  %v1115_v36 = vld [vmem:[%s1760_s9] ss:$0 sm:$0xff] }
 0x18e   :  { %1252 = vmatpush3.bf16.msra.mxu0 %v1364_v30 }
 0x244   :  { %v1184_v38 = vpop.f32.mrb[4].mxu0 }
 0x245   :  { %v1185_v39 = vpop.f32.mrb[5].mxu0 }
 0x246   :  { %v1186_v41 = vadd.f32 %v1185_v39, %v1184_v38  ;;  %v1187_v42 = vpop.f32.mrb[6].mxu0 }
 0x247   :  { %v1188_v43 = vpop.f32.mrb[7].mxu0 }
 0x248   :  { %v743_v44 = vadd.f32 %v1186_v41, %v1081_v40  ;;  %v1189_v45 = vadd.f32 %v1188_v43, %v1187_v42 }
 0x24a   :  { %v784_v46 = vadd.f32 %v783_v25, %v743_v44  ;;  %v746_v47 = vadd.f32 %v1189_v45, %v1081_v40 }
 0x24c   :  { %v787_v48 = vadd.f32 %v786_v27, %v746_v47  ;;  %v790_v49 = vmax.f32 %v784_v46, 0.0 }
 0x24e   :  { %v791_v50 = vmax.f32 %v787_v48, 0.0 }
 0x250   :  { %v792_v51 = vpack.c.bf16 %v791_v50, %v790_v49 }
 0x252   :  { %1254 = vmatmul.mubr.bf16.vlgmr.msra.gmra.mrb[8].mxu0 %v792_v51 }
 0x325   :  { %v898_v55 = vpop.f32.mrb[8].mxu0 }
 0x326   :  { %v899_v56 = vadd.f32 %v1106_v54, %v898_v55  ;;  %v1255_v57 = vpop.f32.mrb[9].mxu0 }
 0x327   :  { %v901_v58 = vpop.f32.mrb[10].mxu0 }
 0x328   :  { %v902_v59 = vadd.f32 %v1106_v54, %v901_v58  ;;  %v1256_v60 = vpop.f32.mrb[11].mxu0  ;;  %v905_v61 = vmax.f32 %v899_v56, 0.0 }
 0x32a   :  { %v906_v62 = vmax.f32 %v902_v59, 0.0 }
 0x32c   :  { %v907_v63 = vpack.c.bf16 %v906_v62, %v905_v61 }
 0x32e   :  { %1274 = vmatmul.mubr.bf16.vlgmr.msra.gmra.mrb[8].mxu1 %v907_v63 }
 0x401   :  { %v1013_v0 = vpop.f32.mrb[8].mxu1 }
 0x402   :  { %v1014_v1 = vadd.f32 %v1115_v36, %v1013_v0  ;;  %v1275_v2 = vpop.f32.mrb[9].mxu1 }
 0x403   :  { %v1016_v3 = vpop.f32.mrb[10].mxu1 }
 0x404   :  { %1020 = vst [vmem:[#allocation14] sm:$0xff] %v1014_v1  ;;  %v1017_v4 = vadd.f32 %v1115_v36, %v1016_v3  ;;  %v1276_v5 = vpop.f32.mrb[11].mxu1 }
 0x406   :  { %1021 = vst [vmem:[#allocation14 + $0x8] sm:$0xff] %v1017_v4 }
 0x407   :  { %1516 = shalt.err (!%p1513_p10)
}
 0x408   :  { %s1517_s21 = scalar_lea.hbm %s1761_s10, 256 }
 0x409   :  { %p1518_p11 = scmp.ne.s32.totalorder %s1761_s10, %s1517_s21  ;;  %p1521_p12 = scmp.lt.u32.totalorder %s1517_s21, %s1761_s10 }
 0x40b   :  { %p1523_p13 = pnand %p1521_p12, %p1518_p11 }
 0x40d   :  { %1526 = shalt.err (!%p1523_p13)
}
 0x40e   :  { %1033 = dma.vmem_to_hbm [thread:$0]  %s1028_s17, 256, %s1761_s10, [#allocation5], %s1538_s23, %s1538_s23, %s1539_s24  }
 0x40f   :  { %1535 = dma.done.wait [#allocation5], 256  }
 0x410   :  { %1536 = vsyncadd [#allocation5], 4294967040 }
 0x411   :  { %1037 = vsyncpa [#allocation4], 1 }
 0x412   :  { %1038 = vsyncpa [#allocation7], 1 }
 0x413   :  { %1039 = vsyncpa [#allocation10], 1 }
 0x414   :  { %1040 = vsyncpa [#allocation13], 1 }
 0x415   :  { %1041 = vsyncpa [#allocation5], 1 }

</bundles_post_ra>
